<compile_context>
chip_gen: v7x
topology: tpu7x:2x2x1
jax: 0.10.0
libtpu: 0.0.40
codegen_flags: <defaults>
</compile_context>

<pallas_src>
import functools

import jax
import jax.numpy as jnp
from jax import lax
from jax.experimental import pallas as pl
from jax.experimental.pallas import tpu as pltpu

EPS = 1e-5  # nn.BatchNorm1d default eps


def _vmem_capacity_bytes():
    try:
        return int(pltpu.get_tpu_info().vmem_capacity_bytes)
    except Exception:
        return 64 * 1024 * 1024  # conservative fallback (v7x per-TensorCore VMEM)


def _pick_l_tile(L, Cin, Cout, weight_bytes):
    """Largest lane-aligned L tile whose pipelined working set fits in VMEM."""
    vmem = _vmem_capacity_bytes()
    # ~48 MiB usable on v7x (64 MiB physical), capped at 96 MiB on v5e/v6e (128 MiB).
    limit = min(int(vmem * 0.75), 96 * 1024 * 1024)
    # f32 bytes per output lane held live: x tile (double-buffered), out tile
    # (double-buffered), shifted-tap temporaries, conv/BN temporaries.
    per_lane = 4 * (2 * Cin + 2 * Cout + 3 * Cin + 2 * Cout)
    avail = max(limit - 2 * weight_bytes, 4 * 1024 * 1024)
    cap = max(128, min(2048, avail // per_lane))
    if L <= cap:
        return int(L), limit              # single full-width tile (== full array dim)
    return int((cap // 128) * 128), limit  # lane-aligned (multiple of 128) tile


def _tap_conv(xc, lh, rh, w2, Cin, Lt, fuse):
    """3-tap conv of one (Cin, Lt) tile; lh/rh are the (Cin, 1) halo columns."""
    xm1 = jnp.concatenate([lh, xc[:, :Lt - 1]], axis=1)   # input column j-1
    xp1 = jnp.concatenate([xc[:, 1:], rh], axis=1)        # input column j+1
    if fuse:
        # small Cin: fuse the 3 taps into one matmul to fill the MXU K dimension.
        taps = jnp.concatenate([xm1, xc, xp1], axis=0)     # (3*Cin, Lt)
        return jnp.dot(w2, taps, preferred_element_type=jnp.float32)
    # large Cin: three accumulating dots, no (3*Cin, Lt) temporary.
    y = jnp.dot(w2[:, 0:Cin], xm1, preferred_element_type=jnp.float32)
    y = y + jnp.dot(w2[:, Cin:2 * Cin], xc, preferred_element_type=jnp.float32)
    y = y + jnp.dot(w2[:, 2 * Cin:3 * Cin], xp1, preferred_element_type=jnp.float32)
    return y


def _stats_kernel(halo_ref, x_ref, w2_ref, sum_ref, ssq_ref, *,
                  Cin, Cout, L, Lt, fuse, partial_tiles):
    """Pass 1: per-sample partial sum / sum-of-squares of the conv output."""
    t = pl.program_id(1)

    @pl.when(t == 0)
    def _init():
        sum_ref[...] = jnp.zeros_like(sum_ref)
        ssq_ref[...] = jnp.zeros_like(ssq_ref)

    xc = x_ref[0]                                          # (Cin, Lt)
    if partial_tiles:                                      # mask lanes past L
        col = t * Lt + lax.broadcasted_iota(jnp.int32, (Cin, Lt), 1)
        xc = jnp.where(col < L, xc, 0.0)
    halo = halo_ref[0, 0]                                  # (Cin, 2)
    y = _tap_conv(xc, halo[:, 0:1], halo[:, 1:2], w2_ref[...], Cin, Lt, fuse)
    if partial_tiles:                                      # don't count invalid cols
        ocol = t * Lt + lax.broadcasted_iota(jnp.int32, (Cout, Lt), 1)
        y = jnp.where(ocol < L, y, 0.0)
    sum_ref[...] += jnp.sum(y, axis=1, keepdims=True)[None]
    ssq_ref[...] += jnp.sum(y * y, axis=1, keepdims=True)[None]


def _apply_body(halo_ref, x_ref, w2_ref, wres_ref, scale_ref, bias_ref, o_ref, *,
                Cin, Cout, L, Lt, fuse, partial_tiles, res_mode):
    """Pass 2: conv -> folded BN (y*scale+bias) -> ReLU -> + residual."""
    t = pl.program_id(1)
    xc = x_ref[0]                                          # (Cin, Lt)
    if partial_tiles:
        col = t * Lt + lax.broadcasted_iota(jnp.int32, (Cin, Lt), 1)
        xc = jnp.where(col < L, xc, 0.0)
    halo = halo_ref[0, 0]                                  # (Cin, 2)
    y = _tap_conv(xc, halo[:, 0:1], halo[:, 1:2], w2_ref[...], Cin, Lt, fuse)
    # folded BatchNorm (training batch stats) + ReLU; Dropout(p=0.0) is identity.
    y = jnp.maximum(y * scale_ref[...] + bias_ref[...], 0.0)
    if res_mode == "conv":
        y = y + jnp.dot(wres_ref[...], xc, preferred_element_type=jnp.float32)
    elif res_mode == "identity":
        y = y + xc
    o_ref[0] = y.astype(o_ref.dtype)


def conv1d_res_block(x, conv_w, gamma, beta, res_w=None, res=True):
    """Forward pass of Conv1dResBlock (training-mode BatchNorm).

    x: (N, Cin, L) f32, conv_w: (Cout, Cin, 3), gamma/beta: (Cout,),
    res_w: (Cout, Cin) 1x1 residual conv weight, or None for Identity residual.
    Returns (N, Cout, L) f32 in the PyTorch layout.
    """
    N, Cin, L = x.shape
    Cout, _, K = conv_w.shape
    assert K == 3, "this kernel implements the kernel_size=3 path"
    assert L >= 2

    if not res:
        res_mode = "none"
    elif res_w is None:
        assert Cin == Cout, "Identity residual requires in_channels == out_channels"
        res_mode = "identity"
    else:
        res_mode = "conv"

    x = x.astype(jnp.float32)
    # Fused tap weights: w2[o, k*Cin + i] = conv_w[o, i, k].
    w2 = jnp.transpose(conv_w, (0, 2, 1)).reshape(Cout, K * Cin).astype(jnp.float32)

    weight_bytes = 4 * (Cout * K * Cin
                        + (Cout * Cin if res_mode == "conv" else 0) + 2 * Cout)
    Lt, vmem_limit = _pick_l_tile(L, Cin, Cout, weight_bytes)
    n_lt = (L + Lt - 1) // Lt
    partial_tiles = (L % Lt) != 0
    fuse = (3 * Cin) < 128   # fuse taps into one MXU K dim only when Cin is small

    # Tiny per-tile halo columns: for tile t, the column just left of the tile and
    # just right of it (real neighbour data inside the array, zeros at the global
    # edges -- i.e. the conv's zero padding).  ~2/Lt of x's bytes.
    starts = jnp.arange(n_lt, dtype=jnp.int32) * Lt
    lidx = jnp.clip(starts - 1, 0, L - 1)
    ridx = jnp.clip(starts + Lt, 0, L - 1)
    lh = jnp.where((starts - 1 >= 0)[None, None, :], x[:, :, lidx], 0.0)
    rh = jnp.where((starts + Lt <= L - 1)[None, None, :], x[:, :, ridx], 0.0)
    halo = jnp.transpose(jnp.stack([lh, rh], axis=-1), (0, 2, 1, 3))  # (N,n_lt,Cin,2)

    common = dict(Cin=Cin, Cout=Cout, L=L, Lt=Lt, fuse=fuse,
                  partial_tiles=partial_tiles)

    halo_spec = pl.BlockSpec((1, 1, Cin, 2), lambda n, t: (n, t, 0, 0))
    x_spec = pl.BlockSpec((1, Cin, Lt), lambda n, t: (n, 0, t))
    w2_spec = pl.BlockSpec((Cout, K * Cin), lambda n, t: (0, 0))
    cvec_spec = pl.BlockSpec((Cout, 1), lambda n, t: (0, 0))

    # ---- Pass 1: per-sample partial sum / sum-of-squares of the conv output. ----
    psum, pssq = pl.pallas_call(
        functools.partial(_stats_kernel, **common),
        out_shape=(jax.ShapeDtypeStruct((N, Cout, 1), jnp.float32),
                   jax.ShapeDtypeStruct((N, Cout, 1), jnp.float32)),
        grid=(N, n_lt),
        in_specs=[halo_spec, x_spec, w2_spec],
        out_specs=(pl.BlockSpec((1, Cout, 1), lambda n, t: (n, 0, 0)),
                   pl.BlockSpec((1, Cout, 1), lambda n, t: (n, 0, 0))),
        compiler_params=pltpu.CompilerParams(
            dimension_semantics=("parallel", "arbitrary"),
            vmem_limit_bytes=vmem_limit),
    )(halo, x, w2)

    # ---- BN finalize + affine fold (tiny, plain JAX). ----------------------------
    # TODO(synk): E[y^2]-E[y]^2 in f32 can lose precision for very large N*L or
    # large |mean|; a shifted/compensated accumulation would be more robust.
    cnt = jnp.float32(N * L)
    s = jnp.sum(psum, axis=0)                              # (Cout, 1)
    q = jnp.sum(pssq, axis=0)
    mean = s / cnt
    var = jnp.maximum(q / cnt - mean * mean, 0.0)          # biased batch variance
    scale = gamma.reshape(Cout, 1).astype(jnp.float32) * lax.rsqrt(var + EPS)
    bias = beta.reshape(Cout, 1).astype(jnp.float32) - mean * scale

    # ---- Pass 2: conv -> y*scale+bias -> ReLU -> + residual. ---------------------
    if res_mode == "conv":
        wres = res_w.astype(jnp.float32)
        kernel2 = functools.partial(_apply_body, **common, res_mode=res_mode)
        in_specs2 = [halo_spec, x_spec, w2_spec,
                     pl.BlockSpec((Cout, Cin), lambda n, t: (0, 0)),
                     cvec_spec, cvec_spec]
        args2 = (halo, x, w2, wres, scale, bias)
    else:
        def kernel2(halo_ref, x_ref, w2_ref, scale_ref, bias_ref, o_ref):
            _apply_body(halo_ref, x_ref, w2_ref, None, scale_ref, bias_ref, o_ref,
                        **common, res_mode=res_mode)
        in_specs2 = [halo_spec, x_spec, w2_spec, cvec_spec, cvec_spec]
        args2 = (halo, x, w2, scale, bias)

    out = pl.pallas_call(
        kernel2,
        out_shape=jax.ShapeDtypeStruct((N, Cout, L), jnp.float32),
        grid=(N, n_lt),
        in_specs=in_specs2,
        out_specs=pl.BlockSpec((1, Cout, Lt), lambda n, t: (n, 0, t)),
        compiler_params=pltpu.CompilerParams(
            dimension_semantics=("parallel", "parallel"),
            vmem_limit_bytes=vmem_limit),
    )(*args2)
    return out


def reference(x, conv_w, gamma, beta, res_w=None, res=True):
    """Pure-JAX reference mirroring the PyTorch forward (training-mode BN)."""
    y = lax.conv_general_dilated(x, conv_w, window_strides=(1,),
                                 padding=((1, 1),),
                                 dimension_numbers=('NCH', 'OIH', 'NCH'))
    mean = jnp.mean(y, axis=(0, 2), keepdims=True)
    var = jnp.mean((y - mean) ** 2, axis=(0, 2), keepdims=True)
    y = (y - mean) / jnp.sqrt(var + EPS) * gamma[None, :, None] + beta[None, :, None]
    y = jnp.maximum(y, 0.0)
    if res:
        y = y + (x if res_w is None else jnp.einsum('oi,nil->nol', res_w, x))
    return y


if __name__ == "__main__":
    # Shapes consistent with Conv1dResBlock: batch=2, in_channels=4, out_channels=8,
    # length=16, kernel_size=3, dilation=1, bias=False, res=True (1x1 residual conv
    # because in_channels != out_channels).
    N, Cin, Cout, L, K = 2, 4, 8, 16, 3
    key = jax.random.PRNGKey(0)
    kx, kw, kr, kg, kb = jax.random.split(key, 5)

    x = jax.random.normal(kx, (N, Cin, L), dtype=jnp.float32)
    conv_w = 0.1 * jax.random.normal(kw, (Cout, Cin, K), dtype=jnp.float32)  # Conv1d weight
    res_w = 0.1 * jax.random.normal(kr, (Cout, Cin), dtype=jnp.float32)      # 1x1 residual conv
    gamma = 1.0 + 0.1 * jax.random.normal(kg, (Cout,), dtype=jnp.float32)    # BN weight
    beta = 0.1 * jax.random.normal(kb, (Cout,), dtype=jnp.float32)           # BN bias
    # TODO(synk): BatchNorm running_mean/running_var buffer updates are stateful
    # training side effects and are not part of the forward output; not modeled.

    out = conv1d_res_block(x, conv_w, gamma, beta, res_w=res_w, res=True)
    out = jax.block_until_ready(out)

    ref = reference(x, conv_w, gamma, beta, res_w=res_w, res=True)
    assert out.shape == (N, Cout, L)
    assert jnp.allclose(out, ref, atol=1e-4, rtol=1e-4), "mismatch vs reference"
    print("KERNEL_OK")
</pallas_src>

<mosaic_0001>
module attributes {stable_mosaic.version = 11 : i64} {
  func.func @_stats_kernel(%arg0: i32, %arg1: i32, %arg2: memref<1x1x4x2xf32, #tpu.memory_space<vmem>>, %arg3: memref<1x4x16xf32, #tpu.memory_space<vmem>>, %arg4: memref<8x12xf32, #tpu.memory_space<vmem>>, %arg5: memref<1x8x1xf32, #tpu.memory_space<vmem>>, %arg6: memref<1x8x1xf32, #tpu.memory_space<vmem>>) attributes {dimension_semantics = [#tpu.dimension_semantics<parallel>, #tpu.dimension_semantics<arbitrary>], iteration_bounds = array<i64: 2, 1>, scalar_prefetch = 0 : i64, scratch_operands = 0 : i64, tpu.core_type = #tpu.core_type<tc>, window_params = [{transform_indices = @transform_0, window_bounds = array<i64: 1, 1, 4, 2>}, {transform_indices = @transform_1, window_bounds = array<i64: 1, 4, 16>}, {pipeline_mode = #tpu.pipeline_mode<synchronous>, transform_indices = @transform_2, window_bounds = array<i64: 8, 12>}, {transform_indices = @transform_3, window_bounds = array<i64: 1, 8, 1>}, {transform_indices = @transform_4, window_bounds = array<i64: 1, 8, 1>}]} {
    %c0_i32 = arith.constant 0 : i32
    %0 = arith.cmpi eq, %arg1, %c0_i32 : i32
    %1 = arith.extui %0 : i1 to i32
    %c0_i32_0 = arith.constant 0 : i32
    %2 = arith.cmpi ne, %1, %c0_i32_0 : i32
    scf.if %2 {
      %cst_23 = arith.constant 0.000000e+00 : f32
      %29 = vector.broadcast %cst_23 : f32 to vector<1x8x1xf32>
      %c0_24 = arith.constant 0 : index
      %c0_25 = arith.constant 0 : index
      %c0_26 = arith.constant 0 : index
      %30 = vector.load %arg5[%c0_24, %c0_25, %c0_26] : memref<1x8x1xf32, #tpu.memory_space<vmem>>, vector<1x8x1xf32>
      tpu.vector_store %arg5[%c0_24, %c0_25, %c0_26], %29 {strides = array<i32>} : memref<1x8x1xf32, #tpu.memory_space<vmem>>, vector<1x8x1xf32>,
      %cst_27 = arith.constant 0.000000e+00 : f32
      %31 = vector.broadcast %cst_27 : f32 to vector<1x8x1xf32>
      %c0_28 = arith.constant 0 : index
      %c0_29 = arith.constant 0 : index
      %c0_30 = arith.constant 0 : index
      %32 = vector.load %arg6[%c0_28, %c0_29, %c0_30] : memref<1x8x1xf32, #tpu.memory_space<vmem>>, vector<1x8x1xf32>
      tpu.vector_store %arg6[%c0_28, %c0_29, %c0_30], %31 {strides = array<i32>} : memref<1x8x1xf32, #tpu.memory_space<vmem>>, vector<1x8x1xf32>,
    } else {
    }
    %c0 = arith.constant 0 : index
    %c0_1 = arith.constant 0 : index
    %c0_2 = arith.constant 0 : index
    %3 = vector.load %arg3[%c0, %c0_1, %c0_2] : memref<1x4x16xf32, #tpu.memory_space<vmem>>, vector<1x4x16xf32>
    %4 = vector.shape_cast %3 : vector<1x4x16xf32> to vector<4x16xf32>
    %c0_3 = arith.constant 0 : index
    %c0_4 = arith.constant 0 : index
    %c0_5 = arith.constant 0 : index
    %c0_6 = arith.constant 0 : index
    %5 = vector.load %arg2[%c0_3, %c0_4, %c0_5, %c0_6] : memref<1x1x4x2xf32, #tpu.memory_space<vmem>>, vector<1x1x4x2xf32>
    %6 = vector.shape_cast %5 : vector<1x1x4x2xf32> to vector<4x2xf32>
    %7 = vector.extract_strided_slice %6 {offsets = [0, 0], sizes = [4, 1], strides = [1, 1]} : vector<4x2xf32> to vector<4x1xf32>
    %8 = vector.extract_strided_slice %6 {offsets = [0, 1], sizes = [4, 1], strides = [1, 1]} : vector<4x2xf32> to vector<4x1xf32>
    %c0_7 = arith.constant 0 : index
    %c0_8 = arith.constant 0 : index
    %9 = vector.load %arg4[%c0_7, %c0_8] : memref<8x12xf32, #tpu.memory_space<vmem>>, vector<8x12xf32>
    %10 = vector.extract_strided_slice %4 {offsets = [0, 0], sizes = [4, 15], strides = [1, 1]} : vector<4x16xf32> to vector<4x15xf32>
    %11 = tpu.concatenate %7, %10 in 1 : vector<4x1xf32>, vector<4x15xf32> -> vector<4x16xf32>
    %12 = vector.extract_strided_slice %4 {offsets = [0, 1], sizes = [4, 15], strides = [1, 1]} : vector<4x16xf32> to vector<4x15xf32>
    %13 = tpu.concatenate %12, %8 in 1 : vector<4x15xf32>, vector<4x1xf32> -> vector<4x16xf32>
    %14 = tpu.concatenate %11, %4, %13 in 0 : vector<4x16xf32>, vector<4x16xf32>, vector<4x16xf32> -> vector<12x16xf32>
    %cst = arith.constant dense<0.000000e+00> : vector<8x16xf32>
    %15 = tpu.matmul %9, %14, %cst {dimension_numbers = #tpu.dot_dimension_numbers<[1], [0], [0], [1], [0, 0, 1, 1], [], []>} : vector<8x12xf32>, vector<12x16xf32>, vector<8x16xf32> -> vector<8x16xf32>
    %c0_9 = arith.constant 0 : index
    %c0_10 = arith.constant 0 : index
    %c0_11 = arith.constant 0 : index
    %16 = vector.load %arg5[%c0_9, %c0_10, %c0_11] : memref<1x8x1xf32, #tpu.memory_space<vmem>>, vector<1x8x1xf32>
    %cst_12 = arith.constant dense<0.000000e+00> : vector<8xf32>
    %17 = vector.multi_reduction <add>, %15, %cst_12 [1] : vector<8x16xf32> to vector<8xf32>
    %18 = vector.shape_cast %17 : vector<8xf32> to vector<8x1xf32>
    %19 = vector.shape_cast %18 : vector<8x1xf32> to vector<1x8x1xf32>
    %20 = arith.addf %16, %19 : vector<1x8x1xf32>
    %c0_13 = arith.constant 0 : index
    %c0_14 = arith.constant 0 : index
    %c0_15 = arith.constant 0 : index
    %21 = vector.load %arg5[%c0_13, %c0_14, %c0_15] : memref<1x8x1xf32, #tpu.memory_space<vmem>>, vector<1x8x1xf32>
    tpu.vector_store %arg5[%c0_13, %c0_14, %c0_15], %20 {strides = array<i32>} : memref<1x8x1xf32, #tpu.memory_space<vmem>>, vector<1x8x1xf32>,
    %c0_16 = arith.constant 0 : index
    %c0_17 = arith.constant 0 : index
    %c0_18 = arith.constant 0 : index
    %22 = vector.load %arg6[%c0_16, %c0_17, %c0_18] : memref<1x8x1xf32, #tpu.memory_space<vmem>>, vector<1x8x1xf32>
    %23 = arith.mulf %15, %15 : vector<8x16xf32>
    %cst_19 = arith.constant dense<0.000000e+00> : vector<8xf32>
    %24 = vector.multi_reduction <add>, %23, %cst_19 [1] : vector<8x16xf32> to vector<8xf32>
    %25 = vector.shape_cast %24 : vector<8xf32> to vector<8x1xf32>
    %26 = vector.shape_cast %25 : vector<8x1xf32> to vector<1x8x1xf32>
    %27 = arith.addf %22, %26 : vector<1x8x1xf32>
    %c0_20 = arith.constant 0 : index
    %c0_21 = arith.constant 0 : index
    %c0_22 = arith.constant 0 : index
    %28 = vector.load %arg6[%c0_20, %c0_21, %c0_22] : memref<1x8x1xf32, #tpu.memory_space<vmem>>, vector<1x8x1xf32>
    tpu.vector_store %arg6[%c0_20, %c0_21, %c0_22], %27 {strides = array<i32>} : memref<1x8x1xf32, #tpu.memory_space<vmem>>, vector<1x8x1xf32>,
    return
  }
  func.func @transform_0(%arg0: i32, %arg1: i32) -> (i32, i32, i32, i32) {
    %c0_i32 = arith.constant 0 : i32
    %c0_i32_0 = arith.constant 0 : i32
    %c0_i32_1 = arith.constant 0 : i32
    return %arg0, %arg1, %c0_i32, %c0_i32_0 : i32, i32, i32, i32
  }
  func.func @transform_1(%arg0: i32, %arg1: i32) -> (i32, i32, i32) {
    %c0_i32 = arith.constant 0 : i32
    %c0_i32_0 = arith.constant 0 : i32
    return %arg0, %c0_i32, %arg1 : i32, i32, i32
  }
  func.func @transform_2(%arg0: i32, %arg1: i32) -> (i32, i32) {
    %c0_i32 = arith.constant 0 : i32
    %c0_i32_0 = arith.constant 0 : i32
    %c0_i32_1 = arith.constant 0 : i32
    return %c0_i32, %c0_i32_0 : i32, i32
  }
  func.func @transform_3(%arg0: i32, %arg1: i32) -> (i32, i32, i32) {
    %c0_i32 = arith.constant 0 : i32
    %c0_i32_0 = arith.constant 0 : i32
    %c0_i32_1 = arith.constant 0 : i32
    return %arg0, %c0_i32, %c0_i32_0 : i32, i32, i32
  }
  func.func @transform_4(%arg0: i32, %arg1: i32) -> (i32, i32, i32) {
    %c0_i32 = arith.constant 0 : i32
    %c0_i32_0 = arith.constant 0 : i32
    %c0_i32_1 = arith.constant 0 : i32
    return %arg0, %c0_i32, %c0_i32_0 : i32, i32, i32
  }
}

</mosaic_0001>

<bundles_post_ra>
// kernel: tpu_custom_call.1
= control target key start
LH: loop header
LB: loop body
LE: loop exit
PB: predicated region body
PF: predicated region fallthrough
CT: control target
= control target key end

     0   :  { %s599_s15 = smov 0   ;;  %s601_s16 = smov 0   ;;  %s650_s0 = inlined_call_operand.vmem [shape: f32[2,1,4,2], index: 0, kind: input, shape index: {}]   ;;  %s651_s1 = inlined_call_operand.vmem [shape: f32[2,4,16], index: 1, kind: input, shape index: {}]   ;;  %s652_s2 = inlined_call_operand.vmem [shape: f32[8,12], index: 2, kind: input, shape index: {}]   ;;  %s653_s3 = inlined_call_operand.vmem [shape: f32[2,8,1], index: 3, kind: output, shape index: {0}]   ;;  %s654_s4 = inlined_call_operand.vmem [shape: f32[2,8,1], index: 4, kind: output, shape index: {1}]  }
   0x1   :  { %s603_s17 = smov 0  }
   0x2 LB: > { %s27_s18 = sadd.s32 1, %s561_s16  ;;  %p489_p0 = scmp.ge.s32.totalorder %s565_s17, 1  ;;  %s565_s17 = sphi %s603_s17, %s15_s17   ;;  %s561_s16 = sphi %s601_s16, %s656_s16   ;;  %s557_s15 = sphi %s599_s15, %s655_s15  }
   0x3   : > { %p29_p1 = scmp.ge.s32.totalorder %s27_s18, 2  ;;  %p195_p2 = scmp.lt.s32.totalorder %s565_s17, 3 }
   0x5   : > { %s658_s18 = smov (%p29_p1, %s27_s18), 0  ;;  %p196_p3 = pnand %p489_p0, %p195_p2 }
   0x6   : > { %p233_p4 = scmp.lt.s32.totalorder (!%p196_p3), %s557_s15, 1  ;;  %v567_v0 = vmov (!%p196_p3), 0.0|0.0   ;;  %vm568_vm0 = vmmov (!%p196_p3), 0   ;;  %v569_v1 = vmov (!%p196_p3), 0.0   ;;  %s570_s26 = smov (!%p196_p3), 1   ;;  %vm259_vm1 = vcmask (!%p196_p3), 7168  }
   0x7   : > { %199 = sbr.rel (%p196_p3) target bundleno = 503 (0x1f7), region = 32  ;;  %508 = vmatprep.subr.bf16.mxu0 (!%p196_p3), %v567_v0  ;;  %505 = vmatprep.mubr.msk.f32.mxu0 (!%p196_p3), %vm568_vm0, %v569_v1  ;;  %s571_s27 = smov (!%p196_p3), 14   ;;  %vm278_vm2 = vcmask (!%p196_p3), 121856   ;;  %vm282_vm3 = vcmask (!%p196_p3), 1043456   ;;  %vm573_vm4 = vmmov (!%p196_p3), 1   ;;  %v264_v12 = vld [vmem:[%s652_s2] sm:$0xff] (!%p196_p3) }
   0x8   : > { %s572_s28 = smov (!%p196_p3), 127   ;;  %vm510_vm5 = vmpackc.low (!%p196_p3), %vm282_vm3, %vm573_vm4  ;;  %vm284_vm6 = vcmask (!%p196_p3), 97280   ;;  %vm362_vm7 = vcmask (!%p196_p3), 130048  }
   0xe   : > { %s660_s15 = smov (!%p233_p4, %s557_s15), 1 }
   0xf   : > { %s490_s19 = sshll.u32 %s660_s15, 2  ;;  %s492_s5 = sshll.u32 %s660_s15, 3 }
  0x10   : > { %s246_s22 = scalar_lea.vmem %s651_s1, %s490_s19  ;;  %s239_s25 = scalar_lea.vmem %s650_s0, %s490_s19 }
  0x11   : > { %v262_v2 = vld [vmem:[%s246_s22] sm:$0xf]  ;;  %s250_s8 = scalar_lea.vmem %s653_s3, %s492_s5  ;;  %s254_s11 = scalar_lea.vmem %s654_s4, %s492_s5 }
  0x12   : > { %v263_v3 = vld [vmem:[%s239_s25] sm:$0xf]  ;;  %266 = vrot.lane.b32.xlu0 %v262_v2, %s570_s26  ;;  %v280_v5 = vrot.slane %v262_v2, 4  ;;  %260 = vst.msk [vmem:[%s250_s8] sm:$0xff] %vm259_vm1, %v569_v1  ;;  %261 = vst.msk [vmem:[%s254_s11] sm:$0xff] %vm259_vm1, %v569_v1 }
  0x13   : > { %275 = vrot.lane.b32.xlu1 %v263_v3, %s571_s27 }
  0x16   : > { %271 = vrot.lane.b32.xlu0 %v262_v2, %s572_s28 }
  0x19   : > { %v361_v18 = vld [vmem:[%s250_s8] sm:$0xff] }
  0x1a   : > { %v368_v20 = vld [vmem:[%s254_s11] sm:$0xff] }
  0x84   : > { %v267_v4 = vpop.permute.xlu0 %266 }
  0x85   : > { %v270_v6 = vsel %vm259_vm1, %v263_v3, %v267_v4  ;;  %v276_v7 = vpop.permute.xlu1 %275 }
  0x86   : > { %v283_v10 = vsel %vm282_vm3, %v270_v6, %v280_v5 }
  0x88   : > { %v272_v8 = vpop.permute.xlu0 %271 }
  0x89   : > { %v279_v9 = vsel %vm278_vm2, %v272_v8, %v276_v7 }
  0x8a   : > { %v509_v11 = vpack.c.bf16 %v279_v9, %v283_v10 }
  0x8c   : > { %511 = vmatpush3.bf16.msk.msra.mxu0 %vm510_vm5, %v509_v11 }
  0x8f   : > { %506 = vmatmul.mubr.msk.f32.vlgmr.msra.gmra.mrb[0].mxu0 %vm284_vm6, %v264_v12 }
 0x162   : > { %v357_v13 = vpop.f32.mrb[0].mxu0 }
 0x163   : > { %v369_v14 = vmul.f32 %v357_v13, %v357_v13  ;;  %v507_v15 = vpop.f32.mrb[1].mxu0  ;;  %v363_v16 = vsel %vm362_vm7, %v357_v13, 0.0 }
 0x164   : > { %364 = vadd.xlane.f32.xlu1 %v363_v16 }
 0x165   : > { %v370_v17 = vsel %vm362_vm7, %v369_v14, 0.0 }
 0x166   : > { %371 = vadd.xlane.f32.xlu0 %v370_v17 }
 0x1f1   : > { %v365_v19 = vpop.xlane.xlu1 %364 }
 0x1f2   : > { %v366_v21 = vadd.f32 %v365_v19, %v361_v18 }
 0x1f3   : > { %v372_v22 = vpop.xlane.xlu0 %371 }
 0x1f4   : > { %367 = vst.msk [vmem:[%s250_s8] sm:$0xff] %vm259_vm1, %v366_v21  ;;  %v373_v23 = vadd.f32 %v372_v22, %v368_v20 }
 0x1f6   : > { %374 = vst.msk [vmem:[%s254_s11] sm:$0xff] %vm259_vm1, %v373_v23 }
 0x1f7 PF: > { %s15_s17 = sadd.s32 1, %s565_s17   ;;  %s655_s15 = smov %s561_s16 }
 0x1f8   : > { %p12_p5 = scmp.ge.s32.totalorder %s15_s17, 4   ;;  %s656_s16 = smov %s658_s18 }
 0x1fa   :  { %14 = sbr.rel (!%p12_p5) target bundleno = 2 (0x2), region = 81 }

</bundles_post_ra>
